<compile_context>
chip_gen: v7x
topology: tpu7x:2x2x1
jax: 0.10.0
libtpu: 0.0.40
codegen_flags: <defaults>
</compile_context>

<pallas_src>
import numpy as np
import jax
import jax.numpy as jnp
from jax.experimental import pallas as pl
from jax.experimental.pallas import tpu as pltpu


# ----------------------------------------------------------------------------
# Glue: interpolation weight matrices (plain numpy, deterministic).
# ----------------------------------------------------------------------------
def _linear_resize_weights(in_size: int, out_size: int) -> np.ndarray:
    """Row-stochastic (out_size, in_size) bilinear weights (align_corners=False, antialias=False)."""
    # TODO(synk): antialias=True (PIL-style) downscaling weights not implemented; these match
    # torch.nn.functional.interpolate(mode="bilinear", antialias=False).
    scale = in_size / out_size
    i = np.arange(out_size, dtype=np.float64)
    src = (i + 0.5) * scale - 0.5
    src = np.clip(src, 0.0, in_size - 1)
    lo = np.floor(src).astype(np.int64)
    hi = np.minimum(lo + 1, in_size - 1)
    frac = (src - lo).astype(np.float32)
    w = np.zeros((out_size, in_size), dtype=np.float32)
    w[np.arange(out_size), lo] += (1.0 - frac)
    w[np.arange(out_size), hi] += frac
    return w


def _resize_output_size(h: int, w: int, resize_size: int) -> tuple[int, int]:
    """torchvision _compute_resized_output_size: short side -> resize_size, long side TRUNCATED."""
    # TODO(synk): resize_max_size (max_size clamp) not implemented (module default is None).
    if w <= h:
        new_w = resize_size
        new_h = int(resize_size * h / w)      # torchvision truncates, not round()
    else:
        new_h = resize_size
        new_w = int(resize_size * w / h)
    return new_h, new_w


def _vmem_physical_bytes() -> int:
    """Generation-aware physical VMEM; falls back to the v7x value (smallest => safe)."""
    try:
        v = int(pltpu.get_tpu_info().vmem_capacity_bytes)
        return int(min(max(v, 32 << 20), 256 << 20))
    except Exception:
        return 64 << 20


# ----------------------------------------------------------------------------
# Pallas kernel: per channel  out[c] = ((Wh @ x[c]) @ WwT) * scale[c] + bias[c]
# grid = (row_split, nk); k tiles the (compacted) source-width contraction.
# ----------------------------------------------------------------------------
def _build_kernel(num_ch: int):
    def kernel(scale_ref, bias_ref, x_ref, wh_ref, wwT_ref, o_ref, acc_ref):
        k = pl.program_id(1)

        @pl.when(k == 0)
        def _():
            acc_ref[...] = jnp.zeros_like(acc_ref)

        wh = wh_ref[...]                       # (ch_blk, Hs)  bf16
        wwT = wwT_ref[...]                     # (w_blk, cw)   bf16
        for c in range(num_ch):                # static unroll over channels (C folded in)
            # direct uint8 -> bf16 (integers 0..255 are exact in bf16); no f32 hop.
            x_c = x_ref[c].astype(jnp.bfloat16)                          # (Hs, w_blk)
            tmp = jnp.dot(wh, x_c, preferred_element_type=jnp.float32)   # (ch_blk, w_blk)
            acc_ref[c] += jnp.dot(tmp.astype(jnp.bfloat16), wwT,
                                  preferred_element_type=jnp.float32)    # (ch_blk, cw)

        @pl.when(k == pl.num_programs(1) - 1)
        def _():
            # fused /255, -mean, /std as a per-channel affine (scalars from SMEM).
            # TODO(synk): torchvision's uint8 tensor path round()+clamp()s back to uint8 after
            # the resize (before convert_image_dtype); that re-quantization is not modeled.
            for c in range(num_ch):
                o_ref[c] = acc_ref[c] * scale_ref[c] + bias_ref[c]

    return kernel


def image_transform(
    img_u8: jax.Array,
    *,
    resize_size: int = 232,
    crop_size: int = 224,
    mean=(0.485, 0.456, 0.406),
    std=(0.229, 0.224, 0.225),
) -> jax.Array:
    """img_u8: uint8 [3, H, W] with values 0..255. Returns float32 [3, crop, crop]."""
    C, H, W = img_u8.shape
    assert C == 3 and img_u8.dtype == jnp.uint8

    new_h, new_w = _resize_output_size(H, W, resize_size)
    ch = cw = int(crop_size)
    assert ch <= new_h and cw <= new_w, "center-crop padding case not supported"
    top = int(round((new_h - ch) / 2.0))
    left = int(round((new_w - cw) / 2.0))

    # resize weights with the center crop folded in (keep only cropped output rows/cols)
    wh = _linear_resize_weights(H, new_h)[top:top + ch, :]      # (ch, H)
    ww = _linear_resize_weights(W, new_w)[left:left + cw, :]    # (cw, W)

    x_in = img_u8

    # ---- H compaction: gather only the (<= 2*ch) source rows with nonzero weight ----
    h_idx = np.flatnonzero(wh.sum(axis=0) > 0.0)
    Hs = int(-(-len(h_idx) // 8) * 8)                           # pad to a sublane multiple
    if 4 * Hs <= 3 * H:                                         # gate: >=25% shrink
        h_pad = np.concatenate([h_idx, np.full(Hs - len(h_idx), h_idx[-1], dtype=np.int64)])
        x_in = jnp.take(x_in, jnp.asarray(h_pad, dtype=jnp.int32), axis=1)
        wh = np.concatenate([wh[:, h_idx],
                             np.zeros((ch, Hs - len(h_idx)), np.float32)], axis=1)
    else:
        Hs = H

    # ---- W compaction: gather only the (<= 2*cw) source cols with nonzero weight ----
    # TODO(synk): a scalar-prefetch in-kernel gather would avoid this extra wrapper pass.
    w_idx = np.flatnonzero(ww.sum(axis=0) > 0.0)
    if 4 * len(w_idx) <= 3 * W:
        x_in = jnp.take(x_in, jnp.asarray(w_idx, dtype=jnp.int32), axis=2)
        ww = np.ascontiguousarray(ww[:, w_idx])
        W_in = int(len(w_idx))
        band_lo, band_hi = 0, W_in
    else:
        W_in = W
        band_lo, band_hi = int(w_idx[0]), int(w_idx[-1]) + 1

    # ---- megacore: even parallel split of the output rows (v7x has 2 TensorCores) ----
    n_rsplit = 2 if (ch % 16 == 0 and ch >= 16) else 1
    ch_blk = ch // n_rsplit

    # ---- generation-aware VMEM budget and W-tile selection ----
    phys = _vmem_physical_bytes()
    budget = int(min(phys // 2, 48 << 20))          # ~24-32 MiB on v7x, 48 MiB on v5e/v6e

    def step_bytes(wb: int) -> int:
        return (2 * C * Hs * wb                     # x tile (uint8), double-buffered
                + 2 * Hs * wb * 2                   # in-kernel bf16 copy of one channel
                + 2 * wb * cw * 2                   # WwT tile (bf16), double-buffered
                + 2 * ch_blk * Hs * 2               # Wh (bf16), double-buffered
                + 2 * C * ch_blk * cw * 4           # output block (f32), double-buffered
                + C * ch_blk * cw * 4               # f32 accumulator scratch
                + 2 * ch_blk * wb * 4)              # per-channel f32 intermediate

    if step_bytes(W_in) <= budget:
        # whole (compacted) width as one block: no reduction loop, no padding tricks.
        w_blk, nk, w_start_blk = W_in, 1, 0
        wwT_np = np.ascontiguousarray(ww.T)                              # (W_in, cw)
    else:
        # band-restricted tiling with 128-aligned blocks.  The partial last x block reads
        # stale VMEM which is neutralized by exact-zero WwT rows; safe because x is uint8
        # (always finite after the cast).
        w_lo = (band_lo // 128) * 128
        w_cap = 128
        for m in range(2048, 127, -128):
            if step_bytes(m) <= budget:
                w_cap = m
                break
        w_blk = min(w_cap, int(-(-(band_hi - w_lo) // 128)) * 128)
        w_start_blk = w_lo // w_blk
        w_start = w_start_blk * w_blk
        nk = int(-(-(band_hi - w_start) // w_blk))
        wwT_np = np.zeros((nk * w_blk, cw), np.float32)
        valid = min(W_in, w_start + nk * w_blk) - w_start
        wwT_np[:valid, :] = ww[:, w_start:w_start + valid].T
        # note: when nk > 1 the x/WwT tiles are re-fetched once per row-split step; in the
        # common compacted case nk == 1 and they are fetched exactly once.

    mean_np = np.asarray(mean, dtype=np.float32)
    std_np = np.asarray(std, dtype=np.float32)
    scale = (1.0 / (255.0 * std_np)).astype(np.float32)                  # folds the /255
    bias = (-mean_np / std_np).astype(np.float32)

    wh_bf16 = jnp.asarray(wh, dtype=jnp.bfloat16)                        # (ch, Hs)
    wwT_bf16 = jnp.asarray(wwT_np, dtype=jnp.bfloat16)                   # (nk*w_blk, cw)

    est = int(step_bytes(w_blk))
    vmem_limit = int(min(max(int(1.3 * est), 16 << 20), phys - (8 << 20)))
    vmem_limit = int(min(max(vmem_limit, est + (4 << 20)), phys - (4 << 20)))

    flops = int(2 * C * ch * (Hs * nk * w_blk + nk * w_blk * cw))
    bytes_accessed = int(C * Hs * nk * w_blk                 # uint8 input tiles
                         + 2 * n_rsplit * wh_bf16.size
                         + 2 * wwT_bf16.size
                         + C * ch * cw * 4)

    out = pl.pallas_call(
        _build_kernel(C),
        out_shape=jax.ShapeDtypeStruct((C, ch, cw), jnp.float32),
        grid=(n_rsplit, nk),
        in_specs=[
            pl.BlockSpec(memory_space=pltpu.MemorySpace.SMEM),                      # scale (3,)
            pl.BlockSpec(memory_space=pltpu.MemorySpace.SMEM),                      # bias  (3,)
            pl.BlockSpec((C, Hs, w_blk), lambda i, k: (0, 0, k + w_start_blk)),     # uint8 tile
            pl.BlockSpec((ch_blk, Hs), lambda i, k: (i, 0)),                        # Wh  (bf16)
            pl.BlockSpec((w_blk, cw), lambda i, k: (k, 0)),                         # Ww^T (bf16)
        ],
        out_specs=pl.BlockSpec((C, ch_blk, cw), lambda i, k: (0, i, 0)),
        scratch_shapes=[pltpu.VMEM((C, ch_blk, cw), jnp.float32)],
        compiler_params=pltpu.CompilerParams(
            dimension_semantics=("parallel", "arbitrary"),
            vmem_limit_bytes=vmem_limit),
        cost_estimate=pl.CostEstimate(flops=flops, transcendentals=0,
                                      bytes_accessed=bytes_accessed),
    )(jnp.asarray(scale), jnp.asarray(bias), x_in, wh_bf16, wwT_bf16)
    return out


# ----------------------------------------------------------------------------
# Pure-numpy reference (f32, uncompacted weights).
# ----------------------------------------------------------------------------
def _reference(img_u8, resize_size, crop_size,
               mean=(0.485, 0.456, 0.406), std=(0.229, 0.224, 0.225)):
    C, H, W = img_u8.shape
    new_h, new_w = _resize_output_size(H, W, resize_size)
    ch = cw = crop_size
    top = int(round((new_h - ch) / 2.0))
    left = int(round((new_w - cw) / 2.0))
    wh = _linear_resize_weights(H, new_h)[top:top + ch, :]
    ww = _linear_resize_weights(W, new_w)[left:left + cw, :]
    x = np.asarray(img_u8).astype(np.float32)
    out = np.einsum("ih,chw,jw->cij", wh, x, ww) / 255.0
    m = np.asarray(mean, np.float32).reshape(3, 1, 1)
    s = np.asarray(std, np.float32).reshape(3, 1, 1)
    return (out - m) / s


if __name__ == "__main__":
    key = jax.random.PRNGKey(0)

    # test 1: tiny image, single grid step, column-gather path
    img1 = jax.random.randint(key, (3, 16, 16), 0, 256, dtype=jnp.int32).astype(jnp.uint8)
    out1 = jax.block_until_ready(image_transform(img1, resize_size=12, crop_size=8))
    ref1 = _reference(img1, 12, 8)
    assert out1.shape == (3, 8, 8) and out1.dtype == jnp.float32
    # bf16 MXU inputs (f32 accumulation): loosened tolerance vs. the f32 reference.
    np.testing.assert_allclose(np.asarray(out1), np.asarray(ref1), rtol=5e-2, atol=5e-2)

    # test 2: exercises row+col gather compaction and the 2-way row split (megacore path)
    key2 = jax.random.PRNGKey(1)
    img2 = jax.random.randint(key2, (3, 96, 128), 0, 256, dtype=jnp.int32).astype(jnp.uint8)
    out2 = jax.block_until_ready(image_transform(img2, resize_size=48, crop_size=32))
    ref2 = _reference(img2, 48, 32)
    assert out2.shape == (3, 32, 32) and out2.dtype == jnp.float32
    np.testing.assert_allclose(np.asarray(out2), np.asarray(ref2), rtol=5e-2, atol=5e-2)

    print("KERNEL_OK")
</pallas_src>

<mosaic_0001>
module attributes {stable_mosaic.version = 11 : i64} {
  func.func @kernel(%arg0: i32, %arg1: i32, %arg2: memref<3xf32, #tpu.memory_space<smem>>, %arg3: memref<3xf32, #tpu.memory_space<smem>>, %arg4: memref<3x16x12xi8, #tpu.memory_space<vmem>>, %arg5: memref<8x16xbf16, #tpu.memory_space<vmem>>, %arg6: memref<12x8xbf16, #tpu.memory_space<vmem>>, %arg7: memref<3x8x8xf32, #tpu.memory_space<vmem>>, %arg8: memref<3x8x8xf32, #tpu.memory_space<vmem>>) attributes {dimension_semantics = [#tpu.dimension_semantics<parallel>, #tpu.dimension_semantics<arbitrary>], iteration_bounds = array<i64: 1, 1>, scalar_prefetch = 0 : i64, scratch_operands = 1 : i64, tpu.core_type = #tpu.core_type<tc>, window_params = [{transform_indices = @transform_0, window_bounds = array<i64: 3>}, {transform_indices = @transform_1, window_bounds = array<i64: 3>}, {transform_indices = @transform_2, window_bounds = array<i64: 3, 16, 12>}, {transform_indices = @transform_3, window_bounds = array<i64: 8, 16>}, {transform_indices = @transform_4, window_bounds = array<i64: 12, 8>}, {transform_indices = @transform_5, window_bounds = array<i64: 3, 8, 8>}]} {
    %c0_i32 = arith.constant 0 : i32
    %0 = arith.cmpi eq, %arg1, %c0_i32 : i32
    %1 = arith.extui %0 : i1 to i32
    %c0_i32_0 = arith.constant 0 : i32
    %2 = arith.cmpi ne, %1, %c0_i32_0 : i32
    scf.if %2 {
      %cst_36 = arith.constant 0.000000e+00 : f32
      %44 = vector.broadcast %cst_36 : f32 to vector<3x8x8xf32>
      %c0_37 = arith.constant 0 : index
      %c0_38 = arith.constant 0 : index
      %c0_39 = arith.constant 0 : index
      %45 = vector.load %arg8[%c0_37, %c0_38, %c0_39] : memref<3x8x8xf32, #tpu.memory_space<vmem>>, vector<3x8x8xf32>
      tpu.vector_store %arg8[%c0_37, %c0_38, %c0_39], %44 {strides = array<i32>} : memref<3x8x8xf32, #tpu.memory_space<vmem>>, vector<3x8x8xf32>,
    } else {
    }
    %c0 = arith.constant 0 : index
    %c0_1 = arith.constant 0 : index
    %3 = vector.load %arg5[%c0, %c0_1] : memref<8x16xbf16, #tpu.memory_space<vmem>>, vector<8x16xbf16>
    %c0_2 = arith.constant 0 : index
    %c0_3 = arith.constant 0 : index
    %4 = vector.load %arg6[%c0_2, %c0_3] : memref<12x8xbf16, #tpu.memory_space<vmem>>, vector<12x8xbf16>
    %c0_4 = arith.constant 0 : index
    %c0_5 = arith.constant 0 : index
    %c0_6 = arith.constant 0 : index
    %5 = vector.load %arg4[%c0_4, %c0_5, %c0_6] : memref<3x16x12xi8, #tpu.memory_space<vmem>>, vector<1x16x12xi8>
    %6 = vector.shape_cast %5 : vector<1x16x12xi8> to vector<16x12xi8>
    %7 = arith.uitofp %6 : vector<16x12xi8> to vector<16x12xbf16>
    %cst = arith.constant dense<0.000000e+00> : vector<8x12xf32>
    %8 = tpu.matmul %3, %7, %cst {dimension_numbers = #tpu.dot_dimension_numbers<[1], [0], [0], [1], [0, 0, 1, 1], [], []>} : vector<8x16xbf16>, vector<16x12xbf16>, vector<8x12xf32> -> vector<8x12xf32>
    %c0_7 = arith.constant 0 : index
    %c0_8 = arith.constant 0 : index
    %c0_9 = arith.constant 0 : index
    %9 = vector.load %arg8[%c0_7, %c0_8, %c0_9] : memref<3x8x8xf32, #tpu.memory_space<vmem>>, vector<1x8x8xf32>
    %10 = vector.shape_cast %9 : vector<1x8x8xf32> to vector<8x8xf32>
    %11 = arith.truncf %8 : vector<8x12xf32> to vector<8x12xbf16>
    %cst_10 = arith.constant dense<0.000000e+00> : vector<8x8xf32>
    %12 = tpu.matmul %11, %4, %cst_10 {dimension_numbers = #tpu.dot_dimension_numbers<[1], [0], [0], [1], [0, 0, 1, 1], [], []>} : vector<8x12xbf16>, vector<12x8xbf16>, vector<8x8xf32> -> vector<8x8xf32>
    %13 = arith.addf %10, %12 : vector<8x8xf32>
    %c0_11 = arith.constant 0 : index
    %c0_12 = arith.constant 0 : index
    %c0_13 = arith.constant 0 : index
    %14 = vector.load %arg8[%c0_11, %c0_12, %c0_13] : memref<3x8x8xf32, #tpu.memory_space<vmem>>, vector<1x8x8xf32>
    %15 = vector.shape_cast %14 : vector<1x8x8xf32> to vector<8x8xf32>
    %16 = vector.shape_cast %13 : vector<8x8xf32> to vector<1x8x8xf32>
    tpu.vector_store %arg8[%c0_11, %c0_12, %c0_13], %16 {strides = array<i32>} : memref<3x8x8xf32, #tpu.memory_space<vmem>>, vector<1x8x8xf32>,
    %c1 = arith.constant 1 : index
    %c0_14 = arith.constant 0 : index
    %c0_15 = arith.constant 0 : index
    %17 = vector.load %arg4[%c1, %c0_14, %c0_15] : memref<3x16x12xi8, #tpu.memory_space<vmem>>, vector<1x16x12xi8>
    %18 = vector.shape_cast %17 : vector<1x16x12xi8> to vector<16x12xi8>
    %19 = arith.uitofp %18 : vector<16x12xi8> to vector<16x12xbf16>
    %cst_16 = arith.constant dense<0.000000e+00> : vector<8x12xf32>
    %20 = tpu.matmul %3, %19, %cst_16 {dimension_numbers = #tpu.dot_dimension_numbers<[1], [0], [0], [1], [0, 0, 1, 1], [], []>} : vector<8x16xbf16>, vector<16x12xbf16>, vector<8x12xf32> -> vector<8x12xf32>
    %c1_17 = arith.constant 1 : index
    %c0_18 = arith.constant 0 : index
    %c0_19 = arith.constant 0 : index
    %21 = vector.load %arg8[%c1_17, %c0_18, %c0_19] : memref<3x8x8xf32, #tpu.memory_space<vmem>>, vector<1x8x8xf32>
    %22 = vector.shape_cast %21 : vector<1x8x8xf32> to vector<8x8xf32>
    %23 = arith.truncf %20 : vector<8x12xf32> to vector<8x12xbf16>
    %cst_20 = arith.constant dense<0.000000e+00> : vector<8x8xf32>
    %24 = tpu.matmul %23, %4, %cst_20 {dimension_numbers = #tpu.dot_dimension_numbers<[1], [0], [0], [1], [0, 0, 1, 1], [], []>} : vector<8x12xbf16>, vector<12x8xbf16>, vector<8x8xf32> -> vector<8x8xf32>
    %25 = arith.addf %22, %24 : vector<8x8xf32>
    %c1_21 = arith.constant 1 : index
    %c0_22 = arith.constant 0 : index
    %c0_23 = arith.constant 0 : index
    %26 = vector.load %arg8[%c1_21, %c0_22, %c0_23] : memref<3x8x8xf32, #tpu.memory_space<vmem>>, vector<1x8x8xf32>
    %27 = vector.shape_cast %26 : vector<1x8x8xf32> to vector<8x8xf32>
    %28 = vector.shape_cast %25 : vector<8x8xf32> to vector<1x8x8xf32>
    tpu.vector_store %arg8[%c1_21, %c0_22, %c0_23], %28 {strides = array<i32>} : memref<3x8x8xf32, #tpu.memory_space<vmem>>, vector<1x8x8xf32>,
    %c2 = arith.constant 2 : index
    %c0_24 = arith.constant 0 : index
    %c0_25 = arith.constant 0 : index
    %29 = vector.load %arg4[%c2, %c0_24, %c0_25] : memref<3x16x12xi8, #tpu.memory_space<vmem>>, vector<1x16x12xi8>
    %30 = vector.shape_cast %29 : vector<1x16x12xi8> to vector<16x12xi8>
    %31 = arith.uitofp %30 : vector<16x12xi8> to vector<16x12xbf16>
    %cst_26 = arith.constant dense<0.000000e+00> : vector<8x12xf32>
    %32 = tpu.matmul %3, %31, %cst_26 {dimension_numbers = #tpu.dot_dimension_numbers<[1], [0], [0], [1], [0, 0, 1, 1], [], []>} : vector<8x16xbf16>, vector<16x12xbf16>, vector<8x12xf32> -> vector<8x12xf32>
    %c2_27 = arith.constant 2 : index
    %c0_28 = arith.constant 0 : index
    %c0_29 = arith.constant 0 : index
    %33 = vector.load %arg8[%c2_27, %c0_28, %c0_29] : memref<3x8x8xf32, #tpu.memory_space<vmem>>, vector<1x8x8xf32>
    %34 = vector.shape_cast %33 : vector<1x8x8xf32> to vector<8x8xf32>
    %35 = arith.truncf %32 : vector<8x12xf32> to vector<8x12xbf16>
    %cst_30 = arith.constant dense<0.000000e+00> : vector<8x8xf32>
    %36 = tpu.matmul %35, %4, %cst_30 {dimension_numbers = #tpu.dot_dimension_numbers<[1], [0], [0], [1], [0, 0, 1, 1], [], []>} : vector<8x12xbf16>, vector<12x8xbf16>, vector<8x8xf32> -> vector<8x8xf32>
    %37 = arith.addf %34, %36 : vector<8x8xf32>
    %c2_31 = arith.constant 2 : index
    %c0_32 = arith.constant 0 : index
    %c0_33 = arith.constant 0 : index
    %38 = vector.load %arg8[%c2_31, %c0_32, %c0_33] : memref<3x8x8xf32, #tpu.memory_space<vmem>>, vector<1x8x8xf32>
    %39 = vector.shape_cast %38 : vector<1x8x8xf32> to vector<8x8xf32>
    %40 = vector.shape_cast %37 : vector<8x8xf32> to vector<1x8x8xf32>
    tpu.vector_store %arg8[%c2_31, %c0_32, %c0_33], %40 {strides = array<i32>} : memref<3x8x8xf32, #tpu.memory_space<vmem>>, vector<1x8x8xf32>,
    %c0_i32_34 = arith.constant 0 : i32
    %41 = arith.cmpi eq, %arg1, %c0_i32_34 : i32
    %42 = arith.extui %41 : i1 to i32
    %c0_i32_35 = arith.constant 0 : i32
    %43 = arith.cmpi ne, %42, %c0_i32_35 : i32
    scf.if %43 {
      %c0_36 = arith.constant 0 : index
      %c0_37 = arith.constant 0 : index
      %c0_38 = arith.constant 0 : index
      %44 = vector.load %arg8[%c0_36, %c0_37, %c0_38] : memref<3x8x8xf32, #tpu.memory_space<vmem>>, vector<1x8x8xf32>
      %45 = vector.shape_cast %44 : vector<1x8x8xf32> to vector<8x8xf32>
      %c0_39 = arith.constant 0 : index
      %46 = memref.load %arg2[%c0_39] : memref<3xf32, #tpu.memory_space<smem>>
      %47 = vector.broadcast %46 : f32 to vector<8x8xf32>
      %48 = arith.mulf %45, %47 : vector<8x8xf32>
      %c0_40 = arith.constant 0 : index
      %49 = memref.load %arg3[%c0_40] : memref<3xf32, #tpu.memory_space<smem>>
      %50 = vector.broadcast %49 : f32 to vector<8x8xf32>
      %51 = arith.addf %48, %50 : vector<8x8xf32>
      %c0_41 = arith.constant 0 : index
      %c0_42 = arith.constant 0 : index
      %c0_43 = arith.constant 0 : index
      %52 = vector.load %arg7[%c0_41, %c0_42, %c0_43] : memref<3x8x8xf32, #tpu.memory_space<vmem>>, vector<1x8x8xf32>
      %53 = vector.shape_cast %52 : vector<1x8x8xf32> to vector<8x8xf32>
      %54 = vector.shape_cast %51 : vector<8x8xf32> to vector<1x8x8xf32>
      tpu.vector_store %arg7[%c0_41, %c0_42, %c0_43], %54 {strides = array<i32>} : memref<3x8x8xf32, #tpu.memory_space<vmem>>, vector<1x8x8xf32>,
      %c1_44 = arith.constant 1 : index
      %c0_45 = arith.constant 0 : index
      %c0_46 = arith.constant 0 : index
      %55 = vector.load %arg8[%c1_44, %c0_45, %c0_46] : memref<3x8x8xf32, #tpu.memory_space<vmem>>, vector<1x8x8xf32>
      %56 = vector.shape_cast %55 : vector<1x8x8xf32> to vector<8x8xf32>
      %c1_47 = arith.constant 1 : index
      %57 = memref.load %arg2[%c1_47] : memref<3xf32, #tpu.memory_space<smem>>
      %58 = vector.broadcast %57 : f32 to vector<8x8xf32>
      %59 = arith.mulf %56, %58 : vector<8x8xf32>
      %c1_48 = arith.constant 1 : index
      %60 = memref.load %arg3[%c1_48] : memref<3xf32, #tpu.memory_space<smem>>
      %61 = vector.broadcast %60 : f32 to vector<8x8xf32>
      %62 = arith.addf %59, %61 : vector<8x8xf32>
      %c1_49 = arith.constant 1 : index
      %c0_50 = arith.constant 0 : index
      %c0_51 = arith.constant 0 : index
      %63 = vector.load %arg7[%c1_49, %c0_50, %c0_51] : memref<3x8x8xf32, #tpu.memory_space<vmem>>, vector<1x8x8xf32>
      %64 = vector.shape_cast %63 : vector<1x8x8xf32> to vector<8x8xf32>
      %65 = vector.shape_cast %62 : vector<8x8xf32> to vector<1x8x8xf32>
      tpu.vector_store %arg7[%c1_49, %c0_50, %c0_51], %65 {strides = array<i32>} : memref<3x8x8xf32, #tpu.memory_space<vmem>>, vector<1x8x8xf32>,
      %c2_52 = arith.constant 2 : index
      %c0_53 = arith.constant 0 : index
      %c0_54 = arith.constant 0 : index
      %66 = vector.load %arg8[%c2_52, %c0_53, %c0_54] : memref<3x8x8xf32, #tpu.memory_space<vmem>>, vector<1x8x8xf32>
      %67 = vector.shape_cast %66 : vector<1x8x8xf32> to vector<8x8xf32>
      %c2_55 = arith.constant 2 : index
      %68 = memref.load %arg2[%c2_55] : memref<3xf32, #tpu.memory_space<smem>>
      %69 = vector.broadcast %68 : f32 to vector<8x8xf32>
      %70 = arith.mulf %67, %69 : vector<8x8xf32>
      %c2_56 = arith.constant 2 : index
      %71 = memref.load %arg3[%c2_56] : memref<3xf32, #tpu.memory_space<smem>>
      %72 = vector.broadcast %71 : f32 to vector<8x8xf32>
      %73 = arith.addf %70, %72 : vector<8x8xf32>
      %c2_57 = arith.constant 2 : index
      %c0_58 = arith.constant 0 : index
      %c0_59 = arith.constant 0 : index
      %74 = vector.load %arg7[%c2_57, %c0_58, %c0_59] : memref<3x8x8xf32, #tpu.memory_space<vmem>>, vector<1x8x8xf32>
      %75 = vector.shape_cast %74 : vector<1x8x8xf32> to vector<8x8xf32>
      %76 = vector.shape_cast %73 : vector<8x8xf32> to vector<1x8x8xf32>
      tpu.vector_store %arg7[%c2_57, %c0_58, %c0_59], %76 {strides = array<i32>} : memref<3x8x8xf32, #tpu.memory_space<vmem>>, vector<1x8x8xf32>,
    } else {
    }
    return
  }
  func.func @transform_0(%arg0: i32, %arg1: i32) -> i32 {
    %c0_i32 = arith.constant 0 : i32
    %c0_i32_0 = arith.constant 0 : i32
    return %c0_i32 : i32
  }
  func.func @transform_1(%arg0: i32, %arg1: i32) -> i32 {
    %c0_i32 = arith.constant 0 : i32
    %c0_i32_0 = arith.constant 0 : i32
    return %c0_i32 : i32
  }
  func.func @transform_2(%arg0: i32, %arg1: i32) -> (i32, i32, i32) {
    %c0_i32 = arith.constant 0 : i32
    %0 = arith.addi %arg1, %c0_i32 : i32
    %c0_i32_0 = arith.constant 0 : i32
    %c0_i32_1 = arith.constant 0 : i32
    %c0_i32_2 = arith.constant 0 : i32
    return %c0_i32_0, %c0_i32_1, %0 : i32, i32, i32
  }
  func.func @transform_3(%arg0: i32, %arg1: i32) -> (i32, i32) {
    %c0_i32 = arith.constant 0 : i32
    %c0_i32_0 = arith.constant 0 : i32
    return %arg0, %c0_i32 : i32, i32
  }
  func.func @transform_4(%arg0: i32, %arg1: i32) -> (i32, i32) {
    %c0_i32 = arith.constant 0 : i32
    %c0_i32_0 = arith.constant 0 : i32
    return %arg1, %c0_i32 : i32, i32
  }
  func.func @transform_5(%arg0: i32, %arg1: i32) -> (i32, i32, i32) {
    %c0_i32 = arith.constant 0 : i32
    %c0_i32_0 = arith.constant 0 : i32
    %c0_i32_1 = arith.constant 0 : i32
    return %c0_i32, %arg0, %c0_i32_0 : i32, i32, i32
  }
}

</mosaic_0001>

<bundles_post_ra>
// kernel: tpu_custom_call.1
= control target key start
LH: loop header
LB: loop body
LE: loop exit
PB: predicated region body
PF: predicated region fallthrough
CT: control target
= control target key end

     0   :  { %10 = vsyncpa [#allocation5], 0  ;;  %s638_s0 = inlined_call_operand.vmem [shape: f32[3], index: 0, kind: input, shape index: {}]   ;;  %s639_s1 = inlined_call_operand.vmem [shape: f32[3], index: 1, kind: input, shape index: {}]   ;;  %s640_s2 = inlined_call_operand.vmem [shape: u8[3,16,12], index: 2, kind: input, shape index: {}]   ;;  %s641_s3 = inlined_call_operand.vmem [shape: bf16[8,16], index: 3, kind: input, shape index: {}]   ;;  %s642_s4 = inlined_call_operand.vmem [shape: bf16[12,8], index: 4, kind: input, shape index: {}]   ;;  %s643_s5 = inlined_call_operand.hbm [shape: f32[3,8,8], index: 5, kind: output, shape index: {}]  }
   0x1   :  { %11 = vsyncpa [#allocation7], 0 }
   0x2   :  { %12 = vsyncpa [#allocation4], 0  ;;  %s19_s20 = sshll.u32 %s638_s0, 4  ;;  %s29_s23 = sshll.u32 %s639_s1, 4  ;;  %s20_s20 = int_to_ptr.vmem [resolvable:$true] %s19_s20  ;;  %s30_s23 = int_to_ptr.vmem [resolvable:$true] %s29_s23 }
   0x3   :  { %s489_s24 = scalar_lea.vmem %s20_s20, 16  ;;  %p494_p1 = scmp.lt.s32.totalorder %s20_s20, %s20_s20 }
   0x4   :  { %p490_p0 = scmp.ne.s32.totalorder %s20_s20, %s489_s24  ;;  %p495_p2 = scmp.lt.s32.totalorder %s489_s24, %s489_s24 }
   0x6   :  { %p496_p3 = por %p495_p2, %p494_p1 }
   0x8   :  { %p497_p4 = pnand %p496_p3, %p490_p0 }
   0xa   :  { %500 = shalt.err (!%p497_p4)
}
   0xb   :  { %s541_s25 = smov [#allocation3]   ;;  %s501_s26 = scalar_lea.vmem %s30_s23, 16 }
   0xc   :  { %22 = dma.vmem_to_smem %s20_s20, 16, %s541_s25, [#allocation5]  }
   0xd   :  { %p502_p5 = scmp.ne.s32.totalorder %s30_s23, %s501_s26  ;;  %p506_p6 = scmp.lt.s32.totalorder %s30_s23, %s30_s23 }
   0xe   :  { %p507_p7 = scmp.lt.s32.totalorder %s501_s26, %s501_s26 }
  0x10   :  { %p508_p8 = por %p507_p7, %p506_p6 }
  0x12   :  { %p509_p9 = pnand %p508_p8, %p502_p5 }
  0x14   :  { %512 = shalt.err (!%p509_p9)
}
  0x15   :  { %s542_s0 = smov [#allocation6]  }
  0x16   :  { %32 = dma.vmem_to_smem %s30_s23, 16, %s542_s0, [#allocation7]  }
  0x17   :  { %535 = dma.done.wait [#allocation5], 16  }
  0x18   :  { %536 = vsyncadd [#allocation5], 4294967280 }
  0x19   :  { %537 = dma.done.wait [#allocation7], 16  }
  0x1a   :  { %538 = vsyncadd [#allocation7], 4294967280 }
  0x1b   :  { %45 = sfence }
  0x1c   :  { %v58_v0 = vld [vmem:[%s640_s2] sm:$0x3]  ;;  %v59_v1 = vld [vmem:[%s640_s2 + $0x2] sm:$0x3]  ;;  %v543_v2 = vmov 0.0   ;;  %vm544_vm0 = vmmov 0  }
  0x1d   :  { %445 = vmatprep.subr.bf16.mxu0 %v543_v2  ;;  %v60_v3 = vunpack.c.l.u8.bf16 %v58_v0  ;;  %v61_v4 = vunpack.c.l.u8.bf16 %v59_v1  ;;  %447 = vmatprep.mubr.msk.bf16.mxu0 %vm544_vm0, %v543_v2  ;;  %v419_v5 = vld [vmem:[%s640_s2 + $0x4] sm:$0x3]  ;;  %v420_v6 = vld [vmem:[%s640_s2 + $0x6] sm:$0x3]  ;;  %v55_v10 = vld [vmem:[%s641_s3] sm:$0xf] }
  0x1e   :  { %v173_v7 = vunpack.c.l.u8.bf16 %v419_v5  ;;  %451 = vmatprep.subr.bf16.mxu1 %v543_v2  ;;  %453 = vmatprep.mubr.msk.bf16.mxu1 %vm544_vm0, %v543_v2  ;;  %v174_v9 = vunpack.c.l.u8.bf16 %v420_v6  ;;  %vm68_vm1 = vcmask 130048   ;;  %v424_v12 = vld [vmem:[%s640_s2 + $0x8] sm:$0x3]  ;;  %v425_v13 = vld [vmem:[%s640_s2 + $0xa] sm:$0x3]  ;;  %vm123_vm2 = vcmask 1045504  }
  0x1f   :  { %v415_v8 = vcombine.low %v60_v3, %v61_v4  ;;  %v272_v14 = vunpack.c.l.u8.bf16 %v424_v12  ;;  %v273_v15 = vunpack.c.l.u8.bf16 %v425_v13  ;;  %v488_v17 = vld [vmem:[%s642_s4] sm:$0x3f]   ;;  %vm51_vm3 = vcmask 64512   ;;  %s372_s2 = sld [smem:[#allocation3]]  ;;  %s429_s16 = sld [smem:[#allocation3 + $0x1]] }
  0x20   :  { %v421_v11 = vcombine.low %v173_v7, %v174_v9  ;;  %v125_v18 = vsel %vm123_vm2, %v488_v17, 0  ;;  %52 = vst.msk [vmem:[#allocation2] sm:$0xff] %vm51_vm3, %v543_v2  ;;  %53 = vst.msk [vmem:[#allocation2 + $0x8] sm:$0xff] %vm51_vm3, %v543_v2  ;;  %vm119_vm4 = vcmask 97280   ;;  %s375_s4 = sld [smem:[#allocation6]]  ;;  %s430_s17 = sld [smem:[#allocation6 + $0x1]] }
  0x21   :  { %446 = vmatpush3.bf16.msra.mxu0 %v415_v8  ;;  %v426_v16 = vcombine.low %v272_v14, %v273_v15  ;;  %452 = vmatpush3.bf16.msra.mxu1 %v125_v18  ;;  %54 = vst.msk [vmem:[#allocation2 + $0x10] sm:$0xff] %vm51_vm3, %v543_v2  ;;  %s431_s18 = sld [smem:[#allocation3 + $0x2]]  ;;  %s545_s20 = smov [#allocation8]  }
  0x22   :  { %457 = vmatprep.subr.bf16.mxu0 %v543_v2  ;;  %463 = vmatprep.subr.bf16.mxu1 %v543_v2  ;;  %s432_s19 = sld [smem:[#allocation6 + $0x2]]  ;;  %s402_s21 = sshll.u32 %s545_s20, 4  ;;  %s403_s21 = int_to_ptr.vmem [resolvable:$true] %s402_s21 }
  0x23   :  { %s513_s22 = scalar_lea.vmem %s403_s21, 384  ;;  %p518_p11 = scmp.lt.s32.totalorder %s403_s21, %s403_s21 }
  0x24   :  { %448 = vmatmul.mubr.msk.bf16.vlgmr.msra.gmra.mrb[0].mxu0 %vm68_vm1, %v55_v10  ;;  %p514_p10 = scmp.ne.s32.totalorder %s403_s21, %s513_s22  ;;  %p519_p12 = scmp.lt.s32.totalorder %s513_s22, %s513_s22 }
  0x25   :  { %458 = vmatpush3.bf16.msra.mxu0 %v421_v11  ;;  %459 = vmatprep.mubr.msk.bf16.mxu0 %vm544_vm0, %v543_v2  ;;  %v373_v42 = vstv %s372_s2  ;;  %v381_v53 = vstv %s429_s16 }
  0x26   :  { %469 = vmatprep.subr.bf16.mxu0 %v543_v2  ;;  %v376_v47 = vstv %s375_s4  ;;  %v384_v58 = vstv %s430_s17  ;;  %p520_p13 = por %p519_p12, %p518_p11 }
  0x27   :  { %v112_v34 = vld [vmem:[#allocation2] sm:$0xff]  ;;  %v222_v40 = vld [vmem:[#allocation2 + $0x8] sm:$0xff]  ;;  %v390_v62 = vstv %s431_s18 }
  0x28   :  { %v321_v51 = vld [vmem:[#allocation2 + $0x10] sm:$0xff]  ;;  %v393_v0 = vstv %s432_s19  ;;  %p521_p0 = pnand %p520_p13, %p514_p10 }
  0x2c   :  { %460 = vmatmul.mubr.msk.bf16.vlgmr.msra.gmra.mrb[4].mxu0 %vm68_vm1, %v55_v10 }
  0x2d   :  { %470 = vmatpush3.bf16.msra.mxu0 %v426_v16  ;;  %471 = vmatprep.mubr.msk.bf16.mxu0 %vm544_vm0, %v543_v2 }
  0x34   :  { %472 = vmatmul.mubr.msk.bf16.vlgmr.msra.gmra.mrb[8].mxu0 %vm68_vm1, %v55_v10 }
  0xf7   :  { %v106_v19 = vpop.f32.mrb[0].mxu0 }
  0xf8   :  { %v113_v20 = vpack.c.bf16 %v106_v19, %v106_v19  ;;  %v449_v21 = vpop.f32.mrb[1].mxu0 }
  0xf9   :  { %v109_v22 = vpop.f32.mrb[2].mxu0 }
  0xfa   :  { %v450_v23 = vpop.f32.mrb[3].mxu0  ;;  %454 = vmatmul.mubr.msk.bf16.vlgmr.msra.gmra.mrb[0].mxu1 %vm119_vm4, %v113_v20 }
  0xfb   :  { %464 = vmatpush3.bf16.msra.mxu1 %v125_v18  ;;  %465 = vmatprep.mubr.msk.bf16.mxu1 %vm544_vm0, %v543_v2 }
  0xfc   :  { %475 = vmatprep.subr.bf16.mxu1 %v543_v2 }
  0xff   :  { %v215_v24 = vpop.f32.mrb[4].mxu0 }
 0x100   :  { %v223_v25 = vpack.c.bf16 %v215_v24, %v215_v24  ;;  %v461_v26 = vpop.f32.mrb[5].mxu0 }
 0x101   :  { %v218_v27 = vpop.f32.mrb[6].mxu0 }
 0x102   :  { %v462_v28 = vpop.f32.mrb[7].mxu0  ;;  %466 = vmatmul.mubr.msk.bf16.vlgmr.msra.gmra.mrb[4].mxu1 %vm119_vm4, %v223_v25 }
 0x103   :  { %476 = vmatpush3.bf16.msra.mxu1 %v125_v18  ;;  %477 = vmatprep.mubr.msk.bf16.mxu1 %vm544_vm0, %v543_v2 }
 0x107   :  { %v314_v29 = vpop.f32.mrb[8].mxu0 }
 0x108   :  { %v322_v30 = vpack.c.bf16 %v314_v29, %v314_v29  ;;  %v473_v31 = vpop.f32.mrb[9].mxu0 }
 0x109   :  { %v317_v32 = vpop.f32.mrb[10].mxu0 }
 0x10a   :  { %v474_v33 = vpop.f32.mrb[11].mxu0  ;;  %478 = vmatmul.mubr.msk.bf16.vlgmr.msra.gmra.mrb[8].mxu1 %vm119_vm4, %v322_v30 }
 0x1cd   :  { %v161_v35 = vpop.f32.mrb[0].mxu1 }
 0x1ce   :  { %v167_v36 = vadd.f32 %v161_v35, %v112_v34  ;;  %v455_v37 = vpop.f32.mrb[1].mxu1 }
 0x1cf   :  { %v164_v38 = vpop.f32.mrb[2].mxu1 }
 0x1d0   :  { %169 = vst.msk [vmem:[#allocation2] sm:$0xff] %vm51_vm3, %v167_v36  ;;  %v456_v39 = vpop.f32.mrb[3].mxu1 }
 0x1d5   :  { %v261_v41 = vpop.f32.mrb[4].mxu1 }
 0x1d6   :  { %v267_v43 = vadd.f32 %v261_v41, %v222_v40  ;;  %v467_v44 = vpop.f32.mrb[5].mxu1 }
 0x1d7   :  { %v264_v45 = vpop.f32.mrb[6].mxu1  ;;  %v371_v46 = vld [vmem:[#allocation2] sm:$0xff] }
 0x1d8   :  { %268 = vst.msk [vmem:[#allocation2 + $0x8] sm:$0xff] %vm51_vm3, %v267_v43  ;;  %v468_v48 = vpop.f32.mrb[7].mxu1  ;;  %v374_v49 = vmul.f32 %v373_v42, %v371_v46 }
 0x1da   :  { %v377_v50 = vadd.f32 %v376_v47, %v374_v49 }
 0x1dc   :  { %378 = vst.msk [vmem:[#allocation8] sm:$0xff] %vm51_vm3, %v377_v50 }
 0x1dd   :  { %v360_v52 = vpop.f32.mrb[8].mxu1 }
 0x1de   :  { %v366_v54 = vadd.f32 %v360_v52, %v321_v51  ;;  %v479_v55 = vpop.f32.mrb[9].mxu1 }
 0x1df   :  { %v363_v56 = vpop.f32.mrb[10].mxu1  ;;  %v379_v57 = vld [vmem:[#allocation2 + $0x8] sm:$0xff] }
 0x1e0   :  { %367 = vst.msk [vmem:[#allocation2 + $0x10] sm:$0xff] %vm51_vm3, %v366_v54  ;;  %v480_v59 = vpop.f32.mrb[11].mxu1  ;;  %v382_v60 = vmul.f32 %v381_v53, %v379_v57 }
 0x1e2   :  { %v385_v61 = vadd.f32 %v384_v58, %v382_v60 }
 0x1e4   :  { %387 = vst.msk [vmem:[#allocation8 + $0x8] sm:$0xff] %vm51_vm3, %v385_v61 }
 0x1e7   :  { %v388_v63 = vld [vmem:[#allocation2 + $0x10] sm:$0xff] }
 0x1e8   :  { %v391_v1 = vmul.f32 %v390_v62, %v388_v63 }
 0x1ea   :  { %v394_v2 = vadd.f32 %v393_v0, %v391_v1 }
 0x1ec   :  { %396 = vst.msk [vmem:[#allocation8 + $0x10] sm:$0xff] %vm51_vm3, %v394_v2 }
 0x1ed   :  { %524 = shalt.err (!%p521_p0)
}
 0x1ee   :  { %s525_s25 = scalar_lea.hbm %s643_s5, 384 }
 0x1ef   :  { %p526_p1 = scmp.ne.s32.totalorder %s643_s5, %s525_s25  ;;  %p529_p2 = scmp.lt.u32.totalorder %s525_s25, %s643_s5 }
 0x1f1   :  { %p531_p3 = pnand %p529_p2, %p526_p1 }
 0x1f3   :  { %534 = shalt.err (!%p531_p3)
}
 0x1f4   :  { %s546_s28 = smov 128   ;;  %s547_s29 = smov 8  }
 0x1f5   :  { %408 = dma.vmem_to_hbm [thread:$0]  %s403_s21, 384, %s643_s5, [#allocation4], %s546_s28, %s546_s28, %s547_s29  }
 0x1f6   :  { %539 = dma.done.wait [#allocation4], 384  }
 0x1f7   :  { %540 = vsyncadd [#allocation4], 4294966912 }
 0x1f8   :  { %412 = vsyncpa [#allocation4], 1 }
 0x1f9   :  { %413 = vsyncpa [#allocation5], 1 }
 0x1fa   :  { %414 = vsyncpa [#allocation7], 1 }

</bundles_post_ra>
